<compile_context>
chip_gen: v6e
topology: v6e:2x2x1
jax: 0.10.0
libtpu: 0.0.40
codegen_flags: <defaults>
</compile_context>

<pallas_src>
import functools

import jax
import jax.numpy as jnp
from jax.experimental import pallas as pl
from jax.experimental.pallas import tpu as pltpu

HIDDEN = 64
LANE = 128          # lane width: pad the output feature dim to a multiple of this
TILE_B_MAX = 512    # batch-tile knee (~85% of HBM roofline per measured data)


def _round_up(x, m):
    return (x + m - 1) // m * m


def _split_packed(wp_ref):
    """Packed (in+1, out) layer -> (bf16 weight (in, out), f32 bias (1, out))."""
    wp = wp_ref[...]
    k = wp.shape[0] - 1
    return wp[:k, :], wp[k:k + 1, :].astype(jnp.float32)


def _mlp_kernel(x_ref, w1p_ref, w2p_ref, w3p_ref, o_ref):
    # x tile: (TILE_B, in_features) f32; weights: bf16 with bias as last row.
    w1, b1 = _split_packed(w1p_ref)
    w2, b2 = _split_packed(w2p_ref)
    w3, b3 = _split_packed(w3p_ref)

    x = x_ref[...].astype(jnp.bfloat16)
    h1 = jnp.tanh(jnp.dot(x, w1, preferred_element_type=jnp.float32) + b1)
    h2 = jnp.tanh(
        jnp.dot(h1.astype(jnp.bfloat16), w2, preferred_element_type=jnp.float32) + b2
    )
    o_ref[...] = (
        jnp.dot(h2.astype(jnp.bfloat16), w3, preferred_element_type=jnp.float32) + b3
    )


def pack_params(params):
    """Pack (W, b) per layer into one bf16 array with bias as the last row.

    The final layer is zero-padded to a multiple of 128 output columns so the
    kernel writes a lane-dense output block.
    """
    def pack(w, b, pad_out=None):
        if pad_out is not None and pad_out > w.shape[1]:
            w = jnp.pad(w, ((0, 0), (0, pad_out - w.shape[1])))
            b = jnp.pad(b, ((0, 0), (0, pad_out - b.shape[1])))
        return jnp.concatenate([w, b], axis=0).astype(jnp.bfloat16)

    n_actions = params["w3"].shape[1]
    out_pad = _round_up(max(n_actions, 1), LANE)
    return {
        "w1p": pack(params["w1"], params["b1"]),
        "w2p": pack(params["w2"], params["b2"]),
        "w3p": pack(params["w3"], params["b3"], pad_out=out_pad),
    }


@functools.partial(jax.jit, static_argnames=("n_actions",))
def linear_map_net_forward(x, packed, n_actions):
    """LinearMapNet forward in one Pallas kernel, gridded over the batch.

    x:      (B, input_shape) float32
    packed: dict from pack_params() -- w1p (in+1,64), w2p (65,64), w3p (65,out_pad) bf16.
    """
    w1p, w2p, w3p = packed["w1p"], packed["w2p"], packed["w3p"]
    batch, in_f = x.shape
    out_pad = w3p.shape[1]

    # Batch tiling: tile is a multiple of 8 sublanes; pad batch so the grid divides evenly.
    tile_b = min(TILE_B_MAX, _round_up(batch, 8))
    padded_b = _round_up(batch, tile_b)
    if padded_b != batch:
        x = jnp.pad(x, ((0, padded_b - batch), (0, 0)))
    grid = (padded_b // tile_b,)

    flops = 2 * padded_b * (in_f * HIDDEN + HIDDEN * HIDDEN + HIDDEN * out_pad)
    bytes_accessed = (
        padded_b * in_f * 4
        + sum(int(p.size) * 2 for p in (w1p, w2p, w3p))
        + padded_b * out_pad * 4
    )
    cost = pl.CostEstimate(
        flops=flops,
        transcendentals=2 * padded_b * HIDDEN,
        bytes_accessed=bytes_accessed,
    )

    y = pl.pallas_call(
        _mlp_kernel,
        out_shape=jax.ShapeDtypeStruct((padded_b, out_pad), jnp.float32),
        grid=grid,
        in_specs=[
            pl.BlockSpec((tile_b, in_f), lambda i: (i, 0)),       # x: tiled over batch
            pl.BlockSpec(w1p.shape, lambda i: (0, 0)),            # weights: resident
            pl.BlockSpec(w2p.shape, lambda i: (0, 0)),
            pl.BlockSpec(w3p.shape, lambda i: (0, 0)),
        ],
        out_specs=pl.BlockSpec((tile_b, out_pad), lambda i: (i, 0)),
        compiler_params=pltpu.CompilerParams(
            dimension_semantics=("parallel",),
        ),
        cost_estimate=cost,
    )(x, w1p, w2p, w3p)

    return y[:batch, :n_actions]


def init_params(key, input_shape, env_actions):
    """Deterministic synthetic init (PyTorch-Linear-like uniform fan-in scaling)."""
    ks = jax.random.split(key, 6)

    def lin(kw, kb, fan_in, fan_out):
        bound = 1.0 / jnp.sqrt(fan_in)
        # stored as (in, out) so the kernel can do x @ W (== PyTorch x @ W.T)
        w = jax.random.uniform(kw, (fan_in, fan_out), jnp.float32, -bound, bound)
        b = jax.random.uniform(kb, (1, fan_out), jnp.float32, -bound, bound)
        return w, b

    w1, b1 = lin(ks[0], ks[1], input_shape, HIDDEN)
    w2, b2 = lin(ks[2], ks[3], HIDDEN, HIDDEN)
    w3, b3 = lin(ks[4], ks[5], HIDDEN, env_actions)
    return {"w1": w1, "b1": b1, "w2": w2, "b2": b2, "w3": w3, "b3": b3}


def _reference_forward_f32(x, p):
    h1 = jnp.tanh(x @ p["w1"] + p["b1"])
    h2 = jnp.tanh(h1 @ p["w2"] + p["b2"])
    return h2 @ p["w3"] + p["b3"]


def _reference_forward_bf16(x, packed, n_actions):
    """Mirrors the kernel's numerics exactly (bf16 matmul operands, f32 accum)."""
    def layer(h, wp, act):
        w = wp[:-1, :]
        b = wp[-1:, :].astype(jnp.float32)
        y = jnp.dot(h.astype(jnp.bfloat16), w, preferred_element_type=jnp.float32) + b
        return jnp.tanh(y) if act else y

    h = layer(x, packed["w1p"], True)
    h = layer(h, packed["w2p"], True)
    return layer(h, packed["w3p"], False)[:, :n_actions]


if __name__ == "__main__":
    key = jax.random.PRNGKey(0)
    k_x, k_p = jax.random.split(key)

    batch = 8          # small batch of observations
    input_shape = 32   # observation dimensionality
    env_actions = 4    # number of discrete actions

    x = jax.random.normal(k_x, (batch, input_shape), dtype=jnp.float32)
    params = init_params(k_p, input_shape, env_actions)
    packed = pack_params(params)

    out = linear_map_net_forward(x, packed, env_actions)
    out = jax.block_until_ready(out)

    assert out.shape == (batch, env_actions)

    ref_exact = _reference_forward_bf16(x, packed, env_actions)
    ref_f32 = _reference_forward_f32(x, params)
    assert jnp.allclose(out, ref_exact, atol=2e-3, rtol=2e-3)
    assert jnp.allclose(out, ref_f32, atol=5e-2, rtol=5e-2)

    print("KERNEL_OK")
</pallas_src>

<mosaic_0001>
module attributes {stable_mosaic.version = 11 : i64} {
  func.func @_mlp_kernel(%arg0: i32, %arg1: memref<8x32xf32, #tpu.memory_space<vmem>>, %arg2: memref<33x64xbf16, #tpu.memory_space<vmem>>, %arg3: memref<65x64xbf16, #tpu.memory_space<vmem>>, %arg4: memref<65x128xbf16, #tpu.memory_space<vmem>>, %arg5: memref<8x128xf32, #tpu.memory_space<vmem>>) attributes {dimension_semantics = [#tpu.dimension_semantics<parallel>], iteration_bounds = array<i64: 1>, scalar_prefetch = 0 : i64, scratch_operands = 0 : i64, tpu.core_type = #tpu.core_type<tc>, window_params = [{transform_indices = @transform_0, window_bounds = array<i64: 8, 32>}, {pipeline_mode = #tpu.pipeline_mode<synchronous>, transform_indices = @transform_1, window_bounds = array<i64: 33, 64>}, {pipeline_mode = #tpu.pipeline_mode<synchronous>, transform_indices = @transform_2, window_bounds = array<i64: 65, 64>}, {pipeline_mode = #tpu.pipeline_mode<synchronous>, transform_indices = @transform_3, window_bounds = array<i64: 65, 128>}, {transform_indices = @transform_4, window_bounds = array<i64: 8, 128>}]} {
    %c0 = arith.constant 0 : index
    %c0_0 = arith.constant 0 : index
    %0 = vector.load %arg2[%c0, %c0_0] : memref<33x64xbf16, #tpu.memory_space<vmem>>, vector<33x64xbf16>
    %1 = vector.extract_strided_slice %0 {offsets = [0, 0], sizes = [32, 64], strides = [1, 1]} : vector<33x64xbf16> to vector<32x64xbf16>
    %2 = vector.extract_strided_slice %0 {offsets = [32, 0], sizes = [1, 64], strides = [1, 1]} : vector<33x64xbf16> to vector<1x64xbf16>
    %3 = arith.extf %2 : vector<1x64xbf16> to vector<1x64xf32>
    %c0_1 = arith.constant 0 : index
    %c0_2 = arith.constant 0 : index
    %4 = vector.load %arg3[%c0_1, %c0_2] : memref<65x64xbf16, #tpu.memory_space<vmem>>, vector<65x64xbf16>
    %5 = vector.extract_strided_slice %4 {offsets = [0, 0], sizes = [64, 64], strides = [1, 1]} : vector<65x64xbf16> to vector<64x64xbf16>
    %6 = vector.extract_strided_slice %4 {offsets = [64, 0], sizes = [1, 64], strides = [1, 1]} : vector<65x64xbf16> to vector<1x64xbf16>
    %7 = arith.extf %6 : vector<1x64xbf16> to vector<1x64xf32>
    %c0_3 = arith.constant 0 : index
    %c0_4 = arith.constant 0 : index
    %8 = vector.load %arg4[%c0_3, %c0_4] : memref<65x128xbf16, #tpu.memory_space<vmem>>, vector<65x128xbf16>
    %9 = vector.extract_strided_slice %8 {offsets = [0, 0], sizes = [64, 128], strides = [1, 1]} : vector<65x128xbf16> to vector<64x128xbf16>
    %10 = vector.extract_strided_slice %8 {offsets = [64, 0], sizes = [1, 128], strides = [1, 1]} : vector<65x128xbf16> to vector<1x128xbf16>
    %11 = arith.extf %10 : vector<1x128xbf16> to vector<1x128xf32>
    %c0_5 = arith.constant 0 : index
    %c0_6 = arith.constant 0 : index
    %12 = vector.load %arg1[%c0_5, %c0_6] : memref<8x32xf32, #tpu.memory_space<vmem>>, vector<8x32xf32>
    %13 = arith.truncf %12 : vector<8x32xf32> to vector<8x32xbf16>
    %cst = arith.constant dense<0.000000e+00> : vector<8x64xf32>
    %14 = tpu.matmul %13, %1, %cst {dimension_numbers = #tpu.dot_dimension_numbers<[1], [0], [0], [1], [0, 0, 1, 1], [], []>} : vector<8x32xbf16>, vector<32x64xbf16>, vector<8x64xf32> -> vector<8x64xf32>
    %15 = vector.broadcast %3 : vector<1x64xf32> to vector<8x64xf32>
    %16 = arith.addf %14, %15 : vector<8x64xf32>
    %17 = math.tanh %16 : vector<8x64xf32>
    %18 = arith.truncf %17 : vector<8x64xf32> to vector<8x64xbf16>
    %cst_7 = arith.constant dense<0.000000e+00> : vector<8x64xf32>
    %19 = tpu.matmul %18, %5, %cst_7 {dimension_numbers = #tpu.dot_dimension_numbers<[1], [0], [0], [1], [0, 0, 1, 1], [], []>} : vector<8x64xbf16>, vector<64x64xbf16>, vector<8x64xf32> -> vector<8x64xf32>
    %20 = vector.broadcast %7 : vector<1x64xf32> to vector<8x64xf32>
    %21 = arith.addf %19, %20 : vector<8x64xf32>
    %22 = math.tanh %21 : vector<8x64xf32>
    %23 = arith.truncf %22 : vector<8x64xf32> to vector<8x64xbf16>
    %cst_8 = arith.constant dense<0.000000e+00> : vector<8x128xf32>
    %24 = tpu.matmul %23, %9, %cst_8 {dimension_numbers = #tpu.dot_dimension_numbers<[1], [0], [0], [1], [0, 0, 1, 1], [], []>} : vector<8x64xbf16>, vector<64x128xbf16>, vector<8x128xf32> -> vector<8x128xf32>
    %25 = vector.broadcast %11 : vector<1x128xf32> to vector<8x128xf32>
    %26 = arith.addf %24, %25 : vector<8x128xf32>
    %c0_9 = arith.constant 0 : index
    %c0_10 = arith.constant 0 : index
    %27 = vector.load %arg5[%c0_9, %c0_10] : memref<8x128xf32, #tpu.memory_space<vmem>>, vector<8x128xf32>
    tpu.vector_store %arg5[%c0_9, %c0_10], %26 {strides = array<i32>} : memref<8x128xf32, #tpu.memory_space<vmem>>, vector<8x128xf32>,
    return
  }
  func.func @transform_0(%arg0: i32) -> (i32, i32) {
    %c0_i32 = arith.constant 0 : i32
    %c0_i32_0 = arith.constant 0 : i32
    return %arg0, %c0_i32 : i32, i32
  }
  func.func @transform_1(%arg0: i32) -> (i32, i32) {
    %c0_i32 = arith.constant 0 : i32
    %c0_i32_0 = arith.constant 0 : i32
    %c0_i32_1 = arith.constant 0 : i32
    return %c0_i32, %c0_i32_0 : i32, i32
  }
  func.func @transform_2(%arg0: i32) -> (i32, i32) {
    %c0_i32 = arith.constant 0 : i32
    %c0_i32_0 = arith.constant 0 : i32
    %c0_i32_1 = arith.constant 0 : i32
    return %c0_i32, %c0_i32_0 : i32, i32
  }
  func.func @transform_3(%arg0: i32) -> (i32, i32) {
    %c0_i32 = arith.constant 0 : i32
    %c0_i32_0 = arith.constant 0 : i32
    %c0_i32_1 = arith.constant 0 : i32
    return %c0_i32, %c0_i32_0 : i32, i32
  }
  func.func @transform_4(%arg0: i32) -> (i32, i32) {
    %c0_i32 = arith.constant 0 : i32
    %c0_i32_0 = arith.constant 0 : i32
    return %arg0, %c0_i32 : i32, i32
  }
}

</mosaic_0001>

<bundles_post_ra>
// kernel: linear_map_net_forward.1
= control target key start
LH: loop header
LB: loop body
LE: loop exit
PB: predicated region body
PF: predicated region fallthrough
CT: control target
= control target key end

     0   :  { %v332_v0 = vmov 0.0   ;;  %vm333_vm0 = vmmov 0   ;;  %vm62_vm1 = vcmask 261120   ;;  %v46_v9 = vlaneseq  ;;  %s406_s1 = inlined_call_operand.vmem [shape: bf16[33,64], index: 1, kind: input, shape index: {}]   ;;  %s407_s0 = inlined_call_operand.vmem [shape: f32[8,32], index: 0, kind: input, shape index: {}]   ;;  %s408_s2 = inlined_call_operand.vmem [shape: bf16[65,64], index: 2, kind: input, shape index: {}]   ;;  %s409_s3 = inlined_call_operand.vmem [shape: bf16[65,128], index: 3, kind: input, shape index: {}]   ;;  %s410_s4 = inlined_call_operand.vmem [shape: f32[8,128], index: 4, kind: output, shape index: {}]  }
   0x1   :  { %284 = vmatprep.subr.bf16.mxu0 %v332_v0  ;;  %v318_v1 = vld [vmem:[%s406_s1 + $0x8] sm:$0xff]   ;;  %288 = vmatprep.mubr.msk.bf16.mxu0 %vm333_vm0, %v332_v0  ;;  %v319_v2 = vld [vmem:[%s406_s1] sm:$0xff]   ;;  %v320_v5 = vld [vmem:[%s408_s2 + $0x18] sm:$0xff]   ;;  %vm136_vm2 = vcmask 523264  }
   0x2   :  { %292 = vmatprep.subr.bf16.mxu1 %v332_v0  ;;  %300 = vmatprep.mubr.msk.bf16.mxu1 %vm333_vm0, %v332_v0  ;;  %v44_v3 = vld [vmem:[%s407_s0] sm:$0xff]  ;;  %v321_v6 = vld [vmem:[%s408_s2 + $0x10] sm:$0xff]   ;;  %v322_v7 = vld [vmem:[%s408_s2 + $0x8] sm:$0xff]   ;;  %v47_v10 = vshrl.u32 %v46_v9, 7 }
   0x3   :  { %285 = vmatpush3.bf16.msra.mxu0 %v318_v1  ;;  %v45_v4 = vpack.c.bf16 %v44_v3, %v44_v3  ;;  %293 = vmatpush3.bf16.msra.mxu1 %v320_v5  ;;  %v323_v8 = vld [vmem:[%s408_s2] sm:$0xff]   ;;  %v22_v11 = vld [vmem:[%s406_s1 + $0x10] sm:$0x1]  ;;  %v324_v22 = vld [vmem:[%s409_s3 + $0x18] sm:$0xff]  }
   0x4   :  { %286 = vmatprep.subr.bf16.mxu0 %v332_v0  ;;  %294 = vmatprep.subr.bf16.mxu1 %v332_v0  ;;  %v23_v12 = vunpack.c.l.bf16 %v22_v11  ;;  %v48_v13 = vsub.s32 0, %v47_v10  ;;  %v325_v23 = vld [vmem:[%s409_s3 + $0x10] sm:$0xff]   ;;  %v326_v24 = vld [vmem:[%s409_s3 + $0x8] sm:$0xff]   ;;  %v327_v25 = vld [vmem:[%s409_s3] sm:$0xff]  }
   0x5   :  { %v32_v26 = vld [vmem:[%s408_s2 + $0x20] sm:$0x1] }
   0x6   :  { %v49_v14 = vrot.slane %v23_v12, %v48_v13  ;;  %v33_v27 = vunpack.c.l.bf16 %v32_v26  ;;  %v42_v36 = vld [vmem:[%s409_s3 + $0x20] sm:$0x1] }
   0x7   :  { %287 = vmatpush3.bf16.msra.mxu0 %v319_v2  ;;  %295 = vmatpush3.bf16.msra.mxu1 %v321_v6  ;;  %v43_v37 = vunpack.c.l.bf16 %v42_v36 }
   0x8   :  { %304 = vmatprep.subr.bf16.mxu0 %v332_v0  ;;  %296 = vmatprep.subr.bf16.mxu1 %v332_v0  ;;  %v111_v28 = vrot.slane %v33_v27, %v48_v13 }
   0x9   :  { %v185_v38 = vrot.slane %v43_v37, %v48_v13 }
   0xa   :  { %289 = vmatmul.mubr.msk.bf16.vlgmr.msra.gmra.mxu0 %vm62_vm1, %v45_v4 }
   0xb   :  { %312 = vmatprep.mubr.msk.bf16.mxu0 %vm333_vm0, %v332_v0  ;;  %297 = vmatpush3.bf16.msra.mxu1 %v322_v7 }
   0xc   :  { %298 = vmatprep.subr.bf16.mxu1 %v332_v0  ;;  %305 = vmatpush3.bf16.msra.mxu0 %v324_v22 }
   0xd   :  { %306 = vmatprep.subr.bf16.mxu0 %v332_v0 }
   0xf   :  { %299 = vmatpush3.bf16.msra.mxu1 %v323_v8 }
  0x10   :  { %307 = vmatpush3.bf16.msra.mxu0 %v325_v23 }
  0x11   :  { %308 = vmatprep.subr.bf16.mxu0 %v332_v0 }
  0x14   :  { %309 = vmatpush3.bf16.msra.mxu0 %v326_v24 }
  0x15   :  { %310 = vmatprep.subr.bf16.mxu0 %v332_v0 }
  0x18   :  { %311 = vmatpush3.bf16.msra.mxu0 %v327_v25 }
  0xca   :  { %v100_v15 = vpop.f32.mrf.mxu0 }
  0xcb   :  { %v101_v16 = vadd.f32 %v100_v15, %v49_v14 }
  0xcc   :  { %v290_v17 = vpop.f32.mrf.mxu0 }
  0xcd   :  { %328 = vtanh.f32 %v101_v16 }
  0xce   :  { %v103_v18 = vpop.f32.mrf.mxu0 }
  0xd0   :  { %v291_v19 = vpop.f32.mrf.mxu0 }
  0xda   :  { %v329_v20 = vpop.eup %328 }
  0xdb   :  { %v107_v21 = vpack.c.bf16 %v329_v20, %v329_v20 }
  0xdd   :  { %301 = vmatmul.mubr.msk.bf16.vlgmr.msra.gmra.mxu1 %vm136_vm2, %v107_v21 }
 0x19d   :  { %v174_v29 = vpop.f32.mrf.mxu1 }
 0x19e   :  { %v175_v30 = vadd.f32 %v174_v29, %v111_v28 }
 0x19f   :  { %v302_v31 = vpop.f32.mrf.mxu1 }
 0x1a0   :  { %330 = vtanh.f32 %v175_v30 }
 0x1a1   :  { %v177_v32 = vpop.f32.mrf.mxu1 }
 0x1a3   :  { %v303_v33 = vpop.f32.mrf.mxu1 }
 0x1ad   :  { %v331_v34 = vpop.eup %330 }
 0x1ae   :  { %v181_v35 = vpack.c.bf16 %v331_v34, %v331_v34 }
 0x1b0   :  { %313 = vmatmul.mubr.msk.bf16.vlgmr.msra.gmra.mxu0 %vm136_vm2, %v181_v35 }
 0x270   :  { %v247_v39 = vpop.f32.mrf.mxu0 }
 0x271   :  { %v248_v40 = vadd.f32 %v247_v39, %v185_v38 }
 0x272   :  { %v314_v41 = vpop.f32.mrf.mxu0 }
 0x273   :  { %253 = vst [vmem:[%s410_s4] sm:$0xff] %v248_v40 }
 0x274   :  { %v250_v42 = vpop.f32.mrf.mxu0 }
 0x276   :  { %v315_v43 = vpop.f32.mrf.mxu0 }

</bundles_post_ra>
